<compile_context>
chip_gen: v6e
topology: v6e:2x2x1
jax: 0.10.0
libtpu: 0.0.40
codegen_flags: <defaults>
</compile_context>

<pallas_src>
import functools

import jax
import jax.numpy as jnp
from jax.experimental import pallas as pl
from jax.experimental.pallas import tpu as pltpu

_MiB = 1024 * 1024
# f32 temporaries per streamed logits element inside the kernel
# (f32 cast of x, z, exp(z), select result, column iota) — budgeted, not exact.
_TEMPS_F32 = 5


def _int_pow(x, gamma):
    """(1 - p)**gamma with plain VPU multiplies when gamma is a small integer."""
    if float(gamma) == int(gamma) and 0 <= int(gamma) <= 8:
        g = int(gamma)
        if g == 0:
            return jnp.ones_like(x)
        out = x
        for _ in range(g - 1):
            out = out * x
        return out
    return jnp.power(x, jnp.float32(gamma))


def _vmem_plan():
    """Per-generation (logits-block target bytes, scoped-VMEM ceiling or None)."""
    try:
        kind = jax.devices()[0].device_kind.lower()
    except Exception:
        kind = ""
    if "v7" in kind:
        # 64 MiB physical VMEM, 3.2 TB/s HBM: big-ish block, explicit budget.
        return 4 * _MiB, 48 * _MiB
    if "v6" in kind:
        # 128 MiB physical VMEM, 1.4 TB/s HBM: 8 MiB block ~95% of roofline.
        return 8 * _MiB, 96 * _MiB
    if "v5e" in kind or ("v5" in kind and "lite" in kind):
        # 128 MiB physical but only 16 MiB default scoped: raise it explicitly.
        return 6 * _MiB, 64 * _MiB
    if "v5" in kind or "v4" in kind:
        return 8 * _MiB, 96 * _MiB
    # Unknown generation: stay within the default scoped-VMEM limit.
    return 2 * _MiB, None


def _focal_ce_kernel(logit_ref, label_ref, out_ref, *, n_valid, gamma):
    tb, c = logit_ref.shape

    x = logit_ref[...].astype(jnp.float32)              # (tb, c)
    y = label_ref[...]                                  # (tb, 1) int32

    col = jax.lax.broadcasted_iota(jnp.int32, (tb, c), 1)

    # numerically stable log-softmax of the true-class probability
    row_max = jnp.max(x, axis=1, keepdims=True)          # (tb, 1)
    z = x - row_max
    sum_exp = jnp.sum(jnp.exp(z), axis=1, keepdims=True)
    # select (vsel), not one-hot cast+multiply
    z_true = jnp.sum(jnp.where(col == y, z, 0.0), axis=1, keepdims=True)
    log_p = z_true - jnp.log(sum_exp)                     # finite, <= 0
    p = jnp.exp(log_p)

    f = -_int_pow(1.0 - p, gamma) * log_p                 # (tb, 1)

    # in-kernel edge mask: select (not multiply) so garbage rows in a padded
    # edge block can never leak NaN/Inf into the partial sum.
    row = jax.lax.broadcasted_iota(jnp.int32, (tb, 1), 0)
    valid = (pl.program_id(0) * tb + row) < n_valid
    f = jnp.where(valid, f, 0.0)

    block_sum = jnp.sum(f).astype(jnp.float32)
    # Per-block partial sum (no resident accumulator) so the grid axis can be
    # "parallel" and v7x's two TensorCores split the batch.
    out_ref[...] = jnp.broadcast_to(block_sum, (8, 128))


def focal_cross_entropy(logit, y_true, alpha, *, gamma=2, size_average=True):
    """JAX/Pallas equivalent of FocalCrossEntropy.forward.

    Args:
      logit:  [batch_size, num_classes] (f32 or bf16; bf16 halves HBM traffic)
      y_true: [batch_size, 1] (or [batch_size]) integer class ids
      alpha:  [num_classes, 1] (or [num_classes]) per-class weights
    Returns:
      scalar float32 loss (same reduction / broadcasting as the torch module).
    """
    if logit.ndim != 2:
        raise ValueError(f"logit must be rank-2, got shape {logit.shape}")
    b, c = logit.shape
    if y_true.shape[0] != b:
        raise ValueError(
            f"y_pred and y_true should have the same batch size, but received "
            f"{b} and {y_true.shape[0]}")
    alpha_flat = jnp.asarray(alpha, jnp.float32).reshape(-1)
    if alpha_flat.shape[0] != c:
        raise ValueError(f"{alpha_flat.shape[0]} != {c}")

    y_flat = jnp.asarray(y_true).reshape(-1).astype(jnp.int32)     # (b,)
    y_idx = y_flat.reshape(b, 1)                                   # (b, 1)

    itemsize = int(jnp.dtype(logit.dtype).itemsize)
    block_target, vmem_ceiling = _vmem_plan()
    budget = vmem_ceiling if vmem_ceiling is not None else 16 * _MiB

    # Per-row VMEM footprint: double-buffered logits stream + f32 temporaries
    # + the lane-padded (tb, 1) labels block (2 buffers x 128 lanes x 4 B).
    per_row = 2 * c * itemsize + _TEMPS_F32 * c * 4 + 2 * 128 * 4
    tb_vmem = max(8, (budget - 2 * _MiB) // per_row)
    tb_target = max(8, block_target // (c * itemsize))
    if b >= 8:
        tb = int(min(tb_target, tb_vmem, (b // 8) * 8))
        tb = max(8, (tb // 8) * 8)
    else:
        tb = b
    grid = int(pl.cdiv(b, tb))

    kernel = functools.partial(_focal_ce_kernel, n_valid=b, gamma=gamma)

    cost = pl.CostEstimate(
        flops=int(8 * b * c),
        transcendentals=int(b * c + 2 * b),
        bytes_accessed=int(b * c * itemsize + b * 4 + grid * 8 * 128 * 4),
    )

    cp_kwargs = dict(dimension_semantics=("parallel",))
    if vmem_ceiling is not None:
        cp_kwargs["vmem_limit_bytes"] = int(vmem_ceiling)

    partials = pl.pallas_call(
        kernel,
        grid=(grid,),
        in_specs=(
            pl.BlockSpec((tb, c), lambda i: (i, 0)),   # logits stream
            pl.BlockSpec((tb, 1), lambda i: (i, 0)),   # labels stream
        ),
        out_specs=pl.BlockSpec((8, 128), lambda i: (i, 0)),
        out_shape=jax.ShapeDtypeStruct((grid * 8, 128), jnp.float32),
        compiler_params=pltpu.CompilerParams(**cp_kwargs),
        cost_estimate=cost,
    )(logit, y_idx)

    s_f = jnp.sum(partials.reshape(grid, 8, 128)[:, 0, 0])
    # alpha[y] gather hoisted out of the kernel: touches only B + C elements.
    s_a = jnp.sum(jnp.take(alpha_flat, y_flat, axis=0))

    # Exact reproduction of the module's [B,1,1] * [B,1] -> [B,B,1] broadcast.
    if size_average:
        return (s_a / jnp.float32(b)) * (s_f / jnp.float32(b))
    return s_a * s_f


if __name__ == "__main__":
    key = jax.random.PRNGKey(0)
    k1, k2, k3 = jax.random.split(key, 3)

    batch, num_classes = 16, 8
    logit = jax.random.normal(k1, (batch, num_classes), dtype=jnp.float32)
    y_true = jax.random.randint(k2, (batch, 1), 0, num_classes)
    alpha = jax.random.uniform(k3, (num_classes, 1),
                               minval=0.25, maxval=1.0, dtype=jnp.float32)

    def torch_semantics_ref(logit, y_true, alpha, gamma, size_average):
        y_pred = jax.nn.softmax(logit, axis=1)
        y_idx = y_true.reshape(-1, 1).astype(jnp.int32)
        p = jnp.take_along_axis(y_pred, y_idx, axis=1)             # [B, 1]
        log_p = jnp.log(p)
        alpha_g = alpha.reshape(-1, 1)[y_idx]                      # [B, 1, 1]
        batch_loss = -alpha_g * jnp.power(1.0 - p, gamma) * log_p  # [B, B, 1]
        return batch_loss.mean() if size_average else batch_loss.sum()

    for size_average in (True, False):
        loss = focal_cross_entropy(logit, y_true, alpha, gamma=2,
                                    size_average=size_average)
        loss = jax.block_until_ready(loss)
        ref = torch_semantics_ref(logit, y_true, alpha, 2, size_average)
        assert jnp.allclose(loss, ref, rtol=1e-5, atol=1e-6), \
            (size_average, loss, ref)

    print("KERNEL_OK")
</pallas_src>

<mosaic_0001>
module attributes {stable_mosaic.version = 11 : i64} {
  func.func @_focal_ce_kernel(%arg0: i32, %arg1: memref<16x8xf32, #tpu.memory_space<vmem>>, %arg2: memref<16x1xi32, #tpu.memory_space<vmem>>, %arg3: memref<8x128xf32, #tpu.memory_space<vmem>>) attributes {dimension_semantics = [#tpu.dimension_semantics<parallel>], iteration_bounds = array<i64: 1>, scalar_prefetch = 0 : i64, scratch_operands = 0 : i64, tpu.core_type = #tpu.core_type<tc>, window_params = [{transform_indices = @transform_0, window_bounds = array<i64: 16, 8>}, {transform_indices = @transform_1, window_bounds = array<i64: 16, 1>}, {transform_indices = @transform_2, window_bounds = array<i64: 8, 128>}]} {
    %c0 = arith.constant 0 : index
    %c0_0 = arith.constant 0 : index
    %0 = vector.load %arg1[%c0, %c0_0] : memref<16x8xf32, #tpu.memory_space<vmem>>, vector<16x8xf32>
    %c0_1 = arith.constant 0 : index
    %c0_2 = arith.constant 0 : index
    %1 = vector.load %arg2[%c0_1, %c0_2] : memref<16x1xi32, #tpu.memory_space<vmem>>, vector<16x1xi32>
    %2 = tpu.iota {dimensions = array<i32: 1>} : vector<16x8xi32>
    %cst = arith.constant dense<0xFF800000> : vector<16xf32>
    %3 = vector.multi_reduction <maximumf>, %0, %cst [1] : vector<16x8xf32> to vector<16xf32>
    %4 = vector.shape_cast %3 : vector<16xf32> to vector<16x1xf32>
    %5 = vector.broadcast %4 : vector<16x1xf32> to vector<16x8xf32>
    %6 = arith.subf %0, %5 : vector<16x8xf32>
    %7 = math.exp %6 : vector<16x8xf32>
    %cst_3 = arith.constant dense<0.000000e+00> : vector<16xf32>
    %8 = vector.multi_reduction <add>, %7, %cst_3 [1] : vector<16x8xf32> to vector<16xf32>
    %9 = vector.shape_cast %8 : vector<16xf32> to vector<16x1xf32>
    %10 = vector.broadcast %1 : vector<16x1xi32> to vector<16x8xi32>
    %11 = arith.cmpi eq, %2, %10 : vector<16x8xi32>
    %cst_4 = arith.constant 0.000000e+00 : f32
    %12 = vector.broadcast %cst_4 : f32 to vector<16x8xf32>
    %13 = arith.select %11, %6, %12 : vector<16x8xi1>, vector<16x8xf32>
    %cst_5 = arith.constant dense<0.000000e+00> : vector<16xf32>
    %14 = vector.multi_reduction <add>, %13, %cst_5 [1] : vector<16x8xf32> to vector<16xf32>
    %15 = vector.shape_cast %14 : vector<16xf32> to vector<16x1xf32>
    %16 = math.log %9 : vector<16x1xf32>
    %17 = arith.subf %15, %16 : vector<16x1xf32>
    %18 = math.exp %17 : vector<16x1xf32>
    %cst_6 = arith.constant 1.000000e+00 : f32
    %19 = vector.broadcast %cst_6 : f32 to vector<16x1xf32>
    %20 = arith.subf %19, %18 : vector<16x1xf32>
    %21 = arith.mulf %20, %20 : vector<16x1xf32>
    %cst_7 = arith.constant 0.000000e+00 : f32
    %22 = vector.broadcast %cst_7 : f32 to vector<16x1xf32>
    %23 = arith.subf %22, %21 : vector<16x1xf32>
    %24 = arith.mulf %23, %17 : vector<16x1xf32>
    %25 = tpu.iota {dimensions = array<i32: 0>} : vector<16x1xi32>
    %c16_i32 = arith.constant 16 : i32
    %26 = arith.muli %arg0, %c16_i32 : i32
    %27 = vector.broadcast %26 : i32 to vector<16x1xi32>
    %28 = arith.addi %27, %25 : vector<16x1xi32>
    %c16_i32_8 = arith.constant 16 : i32
    %29 = vector.broadcast %c16_i32_8 : i32 to vector<16x1xi32>
    %30 = arith.cmpi slt, %28, %29 : vector<16x1xi32>
    %cst_9 = arith.constant 0.000000e+00 : f32
    %31 = vector.broadcast %cst_9 : f32 to vector<16x1xf32>
    %32 = arith.select %30, %24, %31 : vector<16x1xi1>, vector<16x1xf32>
    %33 = vector.shape_cast %32 : vector<16x1xf32> to vector<1x16x1xf32>
    %cst_10 = arith.constant dense<0.000000e+00> : vector<1xf32>
    %34 = vector.multi_reduction <add>, %33, %cst_10 [1, 2] : vector<1x16x1xf32> to vector<1xf32>
    %35 = vector.shape_cast %34 : vector<1xf32> to vector<1x1x1xf32>
    %36 = vector.extract %35[0, 0, 0] : f32 from vector<1x1x1xf32>
    %37 = vector.broadcast %36 : f32 to vector<8x128xf32>
    %c0_11 = arith.constant 0 : index
    %c0_12 = arith.constant 0 : index
    %38 = vector.load %arg3[%c0_11, %c0_12] : memref<8x128xf32, #tpu.memory_space<vmem>>, vector<8x128xf32>
    tpu.vector_store %arg3[%c0_11, %c0_12], %37 {strides = array<i32>} : memref<8x128xf32, #tpu.memory_space<vmem>>, vector<8x128xf32>,
    return
  }
  func.func @transform_0(%arg0: i32) -> (i32, i32) {
    %c0_i32 = arith.constant 0 : i32
    %c0_i32_0 = arith.constant 0 : i32
    return %arg0, %c0_i32 : i32, i32
  }
  func.func @transform_1(%arg0: i32) -> (i32, i32) {
    %c0_i32 = arith.constant 0 : i32
    %c0_i32_0 = arith.constant 0 : i32
    return %arg0, %c0_i32 : i32, i32
  }
  func.func @transform_2(%arg0: i32) -> (i32, i32) {
    %c0_i32 = arith.constant 0 : i32
    %c0_i32_0 = arith.constant 0 : i32
    return %arg0, %c0_i32 : i32, i32
  }
}

</mosaic_0001>

<bundles_post_ra>
// kernel: tpu_custom_call.1
= control target key start
LH: loop header
LB: loop body
LE: loop exit
PB: predicated region body
PF: predicated region fallthrough
CT: control target
= control target key end

     0   :  { %vm18_vm0 = vcmask 64512   ;;  %v151_v4 = vmov 0   ;;  %s189_s0 = inlined_call_operand.vmem [shape: f32[16,8], index: 0, kind: input, shape index: {}]   ;;  %s190_s1 = inlined_call_operand.vmem [shape: s32[16,1], index: 1, kind: input, shape index: {}]   ;;  %s191_s2 = inlined_call_operand.hbm [shape: f32[8,128], index: 2, kind: output, shape index: {}]  }
   0x1   :  { %v12_v0 = vld [vmem:[%s189_s0] sm:$0xff]  ;;  %v13_v1 = vld [vmem:[%s189_s0 + $0x8] sm:$0xff]  ;;  %115 = vset.pattern.permute.xlu1 %v151_v4  ;;  %116 = vset.pattern.permute.xlu0 %v151_v4 }
   0x2   :  { %v14_v2 = vld [vmem:[%s190_s1] sm:$0xff]  ;;  %v19_v3 = vsel %vm18_vm0, %v12_v0, -inf }
   0x3   :  { %7 = vsyncpa [#allocation3], 0  ;;  %20 = vmax.xlane.f32.xlu0 %v19_v3  ;;  %38 = vperm.xlu1 %115, %v14_v2   ;;  %v22_v5 = vsel %vm18_vm0, %v13_v1, -inf  ;;  %v15_v6 = vld [vmem:[%s190_s1 + $0x8] sm:$0xff]  ;;  %v16_v13 = vlaneseq  ;;  %vm82_vm3 = vcmask 7168   ;;  %s152_s0 = smov [#allocation2]  }
   0x4   :  { %s103_s1 = sshll.u32 %s152_s0, 4  ;;  %s104_s1 = int_to_ptr.vmem [resolvable:$true] %s103_s1 }
   0x5   :  { %v17_v15 = vand.u32 127, %v16_v13  ;;  %s129_s18 = scalar_lea.vmem %s104_s1, 128  ;;  %p134_p1 = scmp.lt.s32.totalorder %s104_s1, %s104_s1 }
   0x6   :  { %p130_p0 = scmp.ne.s32.totalorder %s104_s1, %s129_s18  ;;  %p135_p2 = scmp.lt.s32.totalorder %s129_s18, %s129_s18 }
   0x7   :  { %23 = vmax.xlane.f32.xlu0 %v22_v5  ;;  %41 = vperm.xlu1 %115, %v15_v6  }
   0x8   :  { %p136_p3 = por %p135_p2, %p134_p1 }
   0xa   :  { %p137_p4 = pnand %p136_p3, %p130_p0 }
  0x7e   :  { %v39_v14 = vpop.permute.xlu1 %38 }
  0x7f   :  { %vm43_vm1 = vcmp.eq.s32.totalorder %v17_v15, %v39_v14 }
  0x82   :  { %v42_v17 = vpop.permute.xlu1 %41 }
  0x83   :  { %vm44_vm2 = vcmp.eq.s32.totalorder %v17_v15, %v42_v17 }
  0x8c   :  { %v21_v7 = vpop.xlane.xlu0 %20 }
  0x8d   :  { %v25_v8 = vsub.f32 %v12_v0, %v21_v7 }
  0x8f   :  { %v27_v9 = vmul.f32 1.442695, %v25_v8  ;;  %v45_v19 = vsel %vm43_vm1, %v25_v8, 0.0 }
  0x90   :  { %v24_v10 = vpop.xlane.xlu0 %23  ;;  %v47_v21 = vsel %vm18_vm0, %v45_v19, 0.0 }
  0x91   :  { %117 = vpow2.f32 %v27_v9  ;;  %v26_v11 = vsub.f32 %v13_v1, %v24_v10 }
  0x93   :  { %v29_v12 = vmul.f32 1.442695, %v26_v11  ;;  %v46_v23 = vsel %vm44_vm2, %v26_v11, 0.0 }
  0x94   :  { %v50_v24 = vsel %vm18_vm0, %v46_v23, 0.0 }
  0x95   :  { %119 = vpow2.f32 %v29_v12 }
  0x9e   :  { %v118_v16 = vpop.eup %117 }
  0x9f   :  { %v31_v18 = vsel %vm18_vm0, %v118_v16, 0.0 }
  0xa0   :  { %32 = vadd.xlane.f32.xlu0 %v31_v18 }
  0xa2   :  { %v120_v20 = vpop.eup %119 }
  0xa3   :  { %v34_v22 = vsel %vm18_vm0, %v120_v20, 0.0 }
  0xa4   :  { %48 = vadd.xlane.f32.xlu0 %v47_v21  ;;  %35 = vadd.xlane.f32.xlu1 %v34_v22 }
  0xa8   :  { %51 = vadd.xlane.f32.xlu0 %v50_v24 }
 0x129   :  { %v33_v25 = vpop.xlane.xlu0 %32 }
 0x12a   :  { %121 = vlog2.f32 %v33_v25 }
 0x12d   :  { %v36_v26 = vpop.xlane.xlu1 %35  ;;  %v49_v28 = vpop.xlane.xlu0 %48 }
 0x12e   :  { %123 = vlog2.f32 %v36_v26 }
 0x131   :  { %v52_v34 = vpop.xlane.xlu0 %51 }
 0x137   :  { %v122_v27 = vpop.eup %121 }
 0x138   :  { %v54_v29 = vmul.f32 0.6931472, %v122_v27 }
 0x13a   :  { %v57_v30 = vsub.f32 %v49_v28, %v54_v29 }
 0x13b   :  { %v124_v31 = vpop.eup %123 }
 0x13c   :  { %v59_v32 = vmul.f32 1.442695, %v57_v30  ;;  %v56_v33 = vmul.f32 0.6931472, %v124_v31 }
 0x13e   :  { %125 = vpow2.f32 %v59_v32  ;;  %v58_v35 = vsub.f32 %v52_v34, %v56_v33 }
 0x140   :  { %v61_v36 = vmul.f32 1.442695, %v58_v35 }
 0x142   :  { %127 = vpow2.f32 %v61_v36 }
 0x14b   :  { %v126_v37 = vpop.eup %125 }
 0x14c   :  { %v63_v38 = vsub.f32 1.0, %v126_v37 }
 0x14e   :  { %v65_v39 = vmul.f32 %v63_v38, %v63_v38 }
 0x14f   :  { %v128_v40 = vpop.eup %127 }
 0x150   :  { %v67_v41 = vsub.f32 0.0, %v65_v39  ;;  %v64_v42 = vsub.f32 1.0, %v128_v40 }
 0x152   :  { %v66_v43 = vmul.f32 %v64_v42, %v64_v42  ;;  %v69_v44 = vmul.f32 %v67_v41, %v57_v30 }
 0x154   :  { %v68_v45 = vsub.f32 0.0, %v66_v43  ;;  %v83_v47 = vsel %vm82_vm3, %v69_v44, 0.0 }
 0x156   :  { %v70_v46 = vmul.f32 %v68_v45, %v58_v35 }
 0x158   :  { %v84_v48 = vsel %vm82_vm3, %v70_v46, 0.0 }
 0x159   :  { %v85_v49 = vadd.f32 %v84_v48, %v83_v47 }
 0x15b   :  { %86 = vadd.xlane.f32.xlu0 %v85_v49 }
 0x1e4   :  { %v87_v50 = vpop.xlane.xlu0 %86 }
 0x1e5   :  { %v88_v51 = vrot.slane %v87_v50, 4 }
 0x1e7   :  { %v89_v52 = vadd.f32 %v88_v51, %v87_v50 }
 0x1e9   :  { %v90_v53 = vrot.slane %v89_v52, 2 }
 0x1eb   :  { %v91_v54 = vadd.f32 %v90_v53, %v89_v52 }
 0x1ed   :  { %v92_v55 = vrot.slane %v91_v54, 1 }
 0x1ef   :  { %v93_v56 = vadd.f32 %v92_v55, %v91_v54 }
 0x1f1   :  { %111 = vpush %v93_v56 }
 0x222   :  { %s112_s17 = spop %111 }
 0x223   :  { %v95_v57 = vstv %s112_s17 }
 0x224   :  { %96 = vst [vmem:[#allocation2] sm:$0xff] %v95_v57 }
 0x225   :  { %140 = shalt.err (!%p137_p4)
}
 0x226   :  { %106 = dma.vmem_to_hbm [thread:$0]  %s104_s1, 128, %s191_s2, [#allocation3]  }
 0x227   :  { %149 = dma.done.wait [#allocation3], 128  }
 0x228   :  { %150 = vsyncadd [#allocation3], 4294967168 }
 0x229   :  { %110 = vsyncpa [#allocation3], 1 }

</bundles_post_ra>
